<compile_context>
chip_gen: v7x
topology: tpu7x:2x2x1
jax: 0.10.0
libtpu: 0.0.40
codegen_flags: <defaults>
</compile_context>

<pallas_src>
import functools
import math

import jax
import jax.numpy as jnp
from jax.experimental import pallas as pl
from jax.experimental.pallas import tpu as pltpu

GROUPS = 32
EPS = 1e-5


def _round_up(x, m):
    return ((x + m - 1) // m) * m


# --------------------------------------------------------------------------
# Kernel 1: GroupNorm statistics (per-channel sum and sum-of-squares over S).
# Grid (N, p_split, inner); the middle axis is a parallel split of the S
# reduction so both v7x TensorCores stay busy even at batch 1.
# --------------------------------------------------------------------------
def _gn_stats_kernel(x_ref, sum_ref, sq_ref):
    @pl.when(pl.program_id(2) == 0)
    def _():
        sum_ref[...] = jnp.zeros(sum_ref.shape, sum_ref.dtype)
        sq_ref[...] = jnp.zeros(sq_ref.shape, sq_ref.dtype)

    x = x_ref[0]                                       # (blk, C) f32
    sum_ref[0, 0] = sum_ref[0, 0] + jnp.sum(x, axis=0, keepdims=True)
    sq_ref[0, 0] = sq_ref[0, 0] + jnp.sum(x * x, axis=0, keepdims=True)


# --------------------------------------------------------------------------
# Kernel 2: fused GroupNorm apply + QKV projection (single (C, 3C) bf16
# matmul, f32 accumulation).  Writes one fused (1, 3, blk, C) bf16 block.
# --------------------------------------------------------------------------
def _qkv_proj_kernel(x_ref, scale_ref, shift_ref, w_ref, b_ref, qkv_ref):
    C = x_ref.shape[-1]
    gn = x_ref[0] * scale_ref[0] + shift_ref[0]        # (blk, C) f32
    qkv = jnp.dot(gn.astype(jnp.bfloat16), w_ref[...],
                  preferred_element_type=jnp.float32) + b_ref[...]
    qkv_ref[0, 0] = qkv[:, 0:C].astype(jnp.bfloat16)          # Q (pre-scaled)
    qkv_ref[0, 1] = qkv[:, C:2 * C].astype(jnp.bfloat16)      # K
    qkv_ref[0, 2] = qkv[:, 2 * C:3 * C].astype(jnp.bfloat16)  # V


# --------------------------------------------------------------------------
# Kernel 3: flash attention with VMEM-resident K/V + out_proj + residual +
# output transpose (writes NCS layout directly).
# --------------------------------------------------------------------------
def _flash_attn_kernel(q_ref, k_ref, v_ref, x_ref, wo_ref, bo_ref, o_ref,
                       *, s_actual, blk_kv, n_kv, need_mask):
    q = q_ref[0, 0]                                    # (blk_q, C) bf16
    blk_q, C = q.shape

    def tile_update(kv_idx, m, l, acc, mask_tail):
        start = kv_idx * blk_kv
        if not isinstance(start, int):
            start = pl.multiple_of(start, blk_kv)
        k_t = k_ref[0, 0, pl.ds(start, blk_kv), :]     # (blk_kv, C) bf16
        v_t = v_ref[0, 0, pl.ds(start, blk_kv), :]
        # NT matmul on the MXU -- no explicit transpose of K.
        logits = jax.lax.dot_general(q, k_t, (((1,), (1,)), ((), ())),
                                     preferred_element_type=jnp.float32)
        if mask_tail:   # static: only emitted for the last tile when S padded
            kv_pos = start + jax.lax.broadcasted_iota(jnp.int32,
                                                      logits.shape, 1)
            logits = jnp.where(kv_pos < s_actual, logits, -1e30)
        m_new = jnp.maximum(m, jnp.max(logits, axis=-1, keepdims=True))
        alpha = jnp.exp(m - m_new)
        p = jnp.exp(logits - m_new)
        l_new = alpha * l + jnp.sum(p, axis=-1, keepdims=True)
        acc_new = alpha * acc + jnp.dot(p.astype(jnp.bfloat16), v_t,
                                        preferred_element_type=jnp.float32)
        return m_new, l_new, acc_new

    m0 = jnp.full((blk_q, 1), -jnp.inf, jnp.float32)
    l0 = jnp.zeros((blk_q, 1), jnp.float32)
    acc0 = jnp.zeros((blk_q, C), jnp.float32)

    n_unmasked = n_kv - 1 if need_mask else n_kv

    def body(t, carry):
        m, l, acc = carry
        return tile_update(t, m, l, acc, False)

    m, l, acc = jax.lax.fori_loop(0, n_unmasked, body, (m0, l0, acc0))
    if need_mask:
        m, l, acc = tile_update(n_kv - 1, m, l, acc, True)

    # exact reciprocal: runs once per q tile, negligible cost, better parity
    o = acc * pl.reciprocal(l, approx=False)
    out = jnp.dot(o.astype(jnp.bfloat16), wo_ref[...],
                  preferred_element_type=jnp.float32) + bo_ref[...]
    # residual uses raw x; transpose the tile in-kernel (XLU) -> NCS output
    o_ref[0] = jnp.transpose(x_ref[0] + out)           # (C, blk_q)


def _flash_vmem_bytes(blk_q, blk_kv, s_pad, C):
    kv_resident = 2 * s_pad * C * 2 * 2     # K+V bf16, double-buffered
    q_tiles = blk_q * C * 2 * 2
    x_tiles = blk_q * C * 4 * 2
    out_tiles = C * blk_q * 4 * 2
    weights = (C * C * 2 + C * 4) * 2
    carries = blk_q * C * 4 + 2 * blk_q * 4 * 128
    interm = 4 * blk_q * blk_kv * 4
    est = (kv_resident + q_tiles + x_tiles + out_tiles
           + weights + carries + interm)
    try:
        cap = pltpu.get_tpu_info().vmem_capacity_bytes
    except Exception:
        cap = 128 << 20
    return int(min(max(int(1.5 * est), 32 << 20), int(0.72 * cap)))


# --------------------------------------------------------------------------
# Wrapper: NCHW in/out.  Weight prep + tiny group-stat combine are host-side.
# --------------------------------------------------------------------------
def vae_attention_block(x, params, *, seq_block=512):
    """x: (N, C, H, W) float32. Returns (N, C, H, W) float32."""
    N, C, H, W = x.shape
    assert C % GROUPS == 0, "GroupNorm(32, C) requires C % 32 == 0"
    S = H * W

    seq_block = max(128, _round_up(seq_block, 128))    # lane-dense out blocks
    # one-time layout change: sequence-major (N, S, C)
    xs = jnp.transpose(x.reshape(N, C, S), (0, 2, 1))

    blk = min(seq_block, _round_up(S, 8))
    s_pad = _round_up(S, blk)
    if s_pad != S:
        xs = jnp.pad(xs, ((0, 0), (0, s_pad - S), (0, 0)))
    num_s = s_pad // blk

    # ---- 1) GroupNorm statistics -----------------------------------------
    p_split = 2 if (num_s % 2 == 0 and num_s >= 2) else 1
    inner = num_s // p_split
    sums, sqs = pl.pallas_call(
        _gn_stats_kernel,
        out_shape=(jax.ShapeDtypeStruct((N, p_split, 1, C), jnp.float32),
                   jax.ShapeDtypeStruct((N, p_split, 1, C), jnp.float32)),
        grid=(N, p_split, inner),
        in_specs=[pl.BlockSpec((1, blk, C),
                               lambda n, p, s: (n, p * inner + s, 0))],
        out_specs=(pl.BlockSpec((1, 1, 1, C), lambda n, p, s: (n, p, 0, 0)),
                   pl.BlockSpec((1, 1, 1, C), lambda n, p, s: (n, p, 0, 0))),
        compiler_params=pltpu.CompilerParams(
            dimension_semantics=("parallel", "parallel", "arbitrary")),
    )(xs)

    # tiny (N, C) group combine; fold mean/rstd + gamma/beta into scale/shift
    cpg = C // GROUPS
    cnt = float(S * cpg)                                  # real (unpadded) count
    sum_c = sums.sum(axis=(1, 2))                         # (N, C)
    sq_c = sqs.sum(axis=(1, 2))
    gsum = sum_c.reshape(N, GROUPS, cpg).sum(axis=-1)     # (N, 32)
    gsq = sq_c.reshape(N, GROUPS, cpg).sum(axis=-1)
    gmean = gsum / cnt
    gvar = jnp.maximum((gsq - gsum * gmean) / cnt, 0.0)   # centered + clamped
    grstd = jax.lax.rsqrt(gvar + EPS)
    mean_c = jnp.repeat(gmean, cpg, axis=1)               # (N, C)
    rstd_c = jnp.repeat(grstd, cpg, axis=1)
    gamma = params["gamma"].reshape(1, C)
    beta = params["beta"].reshape(1, C)
    scale = (gamma * rstd_c).reshape(N, 1, C)
    shift = (beta - mean_c * gamma * rstd_c).reshape(N, 1, C)

    # host-side weight prep: pre-transpose, fuse QKV, fold softmax scale into Q
    sm = 1.0 / math.sqrt(C)                                # d_head = C, 1 head
    w_qkv = jnp.concatenate([params["wq"] * sm, params["wk"], params["wv"]],
                            axis=0).T.astype(jnp.bfloat16)          # (C, 3C)
    b_qkv = jnp.concatenate([params["bq"] * sm, params["bk"], params["bv"]],
                            axis=1).astype(jnp.float32)             # (1, 3C)
    w_o = params["wo"].T.astype(jnp.bfloat16)                       # (C, C)
    b_o = params["bo"].astype(jnp.float32)                          # (1, C)

    # ---- 2) fused GroupNorm-apply + QKV projection ------------------------
    qkv = pl.pallas_call(
        _qkv_proj_kernel,
        out_shape=jax.ShapeDtypeStruct((N, 3, s_pad, C), jnp.bfloat16),
        grid=(N, num_s),
        in_specs=[
            pl.BlockSpec((1, blk, C), lambda n, s: (n, s, 0)),   # x
            pl.BlockSpec((1, 1, C), lambda n, s: (n, 0, 0)),     # scale
            pl.BlockSpec((1, 1, C), lambda n, s: (n, 0, 0)),     # shift
            pl.BlockSpec((C, 3 * C), lambda n, s: (0, 0)),       # w_qkv
            pl.BlockSpec((1, 3 * C), lambda n, s: (0, 0)),       # b_qkv
        ],
        out_specs=pl.BlockSpec((1, 3, blk, C), lambda n, s: (n, 0, s, 0)),
        compiler_params=pltpu.CompilerParams(
            dimension_semantics=("parallel", "parallel")),
    )(xs, scale, shift, w_qkv, b_qkv)

    # ---- 3) flash attention (resident K/V) + out_proj + residual ----------
    blk_kv = blk
    n_kv = s_pad // blk_kv
    need_mask = (s_pad != S)
    kernel = functools.partial(_flash_attn_kernel, s_actual=S, blk_kv=blk_kv,
                               n_kv=n_kv, need_mask=need_mask)

    flops = 4 * N * s_pad * s_pad * C + 2 * N * s_pad * C * C
    bytes_accessed = (N * 3 * s_pad * C * 2        # q/k/v (K,V read once per n)
                      + N * s_pad * C * 4          # residual x
                      + N * C * s_pad * 4          # output
                      + C * C * 2 + C * 4)         # weights
    cost = pl.CostEstimate(flops=flops,
                           transcendentals=N * s_pad * s_pad,
                           bytes_accessed=bytes_accessed)

    out_ncs = pl.pallas_call(
        kernel,
        out_shape=jax.ShapeDtypeStruct((N, C, s_pad), jnp.float32),
        grid=(N, num_s),
        in_specs=[
            pl.BlockSpec((1, 1, blk, C), lambda n, qi: (n, 0, qi, 0)),   # Q
            pl.BlockSpec((1, 1, s_pad, C), lambda n, qi: (n, 1, 0, 0)),  # K (resident)
            pl.BlockSpec((1, 1, s_pad, C), lambda n, qi: (n, 2, 0, 0)),  # V (resident)
            pl.BlockSpec((1, blk, C), lambda n, qi: (n, qi, 0)),         # residual x
            pl.BlockSpec((C, C), lambda n, qi: (0, 0)),                  # w_o
            pl.BlockSpec((1, C), lambda n, qi: (0, 0)),                  # b_o
        ],
        out_specs=pl.BlockSpec((1, C, blk), lambda n, qi: (n, 0, qi)),
        compiler_params=pltpu.CompilerParams(
            dimension_semantics=("parallel", "parallel"),
            vmem_limit_bytes=_flash_vmem_bytes(blk, blk_kv, s_pad, C)),
        cost_estimate=cost,
    )(qkv, qkv, qkv, xs, w_o, b_o)

    # output is already channel-major; just drop padding and reshape
    return out_ncs[:, :, :S].reshape(N, C, H, W)


# --------------------------------------------------------------------------
# Parameters (PyTorch-layout) and pure-JAX reference.
# --------------------------------------------------------------------------
def make_params(key, channels):
    C = channels
    ks = jax.random.split(key, 6)
    gamma = 1.0 + 0.1 * jax.random.normal(ks[4], (C, 1), jnp.float32)
    beta = 0.1 * jax.random.normal(ks[5], (C, 1), jnp.float32)
    w_in = jax.random.normal(ks[0], (3 * C, C), jnp.float32) * 0.02
    b_in = jax.random.normal(ks[1], (3 * C,), jnp.float32) * 0.02
    w_out = jax.random.normal(ks[2], (C, C), jnp.float32) * 0.02
    b_out = jax.random.normal(ks[3], (C,), jnp.float32) * 0.02
    return {
        "gamma": gamma, "beta": beta,
        "wq": w_in[0 * C:1 * C], "wk": w_in[1 * C:2 * C], "wv": w_in[2 * C:3 * C],
        "bq": b_in[0 * C:1 * C].reshape(1, C),
        "bk": b_in[1 * C:2 * C].reshape(1, C),
        "bv": b_in[2 * C:3 * C].reshape(1, C),
        "wo": w_out, "bo": b_out.reshape(1, C),
    }


def reference(x, p):
    N, C, H, W = x.shape
    HW = H * W
    xr = x.reshape(N, GROUPS, (C // GROUPS) * HW)
    mean = xr.mean(axis=2, keepdims=True)
    var = ((xr - mean) ** 2).mean(axis=2, keepdims=True)
    xn = ((xr - mean) / jnp.sqrt(var + EPS)).reshape(N, C, HW)
    gn = xn * p["gamma"][None, :, 0, None] + p["beta"][None, :, 0, None]
    xs = jnp.swapaxes(gn, 1, 2)                        # (N, S, C)
    q = xs @ p["wq"].T + p["bq"]
    k = xs @ p["wk"].T + p["bk"]
    v = xs @ p["wv"].T + p["bv"]
    logits = (q @ jnp.swapaxes(k, 1, 2)) / math.sqrt(C)
    w = jax.nn.softmax(logits, axis=-1)
    o = w @ v
    o = o @ p["wo"].T + p["bo"]
    return x + jnp.swapaxes(o, 1, 2).reshape(N, C, H, W)


if __name__ == "__main__":
    key = jax.random.PRNGKey(0)
    k_x, k_p = jax.random.split(key)

    # channels must be divisible by 32 for GroupNorm(32, channels)
    N, C, H, W = 2, 64, 8, 8
    x = jax.random.normal(k_x, (N, C, H, W), jnp.float32)
    params = make_params(k_p, C)

    out = jax.block_until_ready(vae_attention_block(x, params))
    ref = reference(x, params)
    assert out.shape == (N, C, H, W)
    err = float(jnp.max(jnp.abs(out - ref)))
    # bf16 matmuls with f32 accumulation -> loosened tolerance
    assert jnp.allclose(out, ref, atol=2e-2, rtol=2e-2), f"max err {err}"

    # second shape exercises the padded / masked-last-kv-tile path
    H2 = W2 = 6
    x2 = jax.random.normal(k_x, (1, C, H2, W2), jnp.float32)
    out2 = jax.block_until_ready(vae_attention_block(x2, params))
    ref2 = reference(x2, params)
    err2 = float(jnp.max(jnp.abs(out2 - ref2)))
    assert jnp.allclose(out2, ref2, atol=2e-2, rtol=2e-2), f"max err {err2}"

    print("KERNEL_OK")
</pallas_src>

<mosaic_0001>
module attributes {stable_mosaic.version = 11 : i64} {
  func.func @_gn_stats_kernel(%arg0: i32, %arg1: i32, %arg2: i32, %arg3: memref<1x64x64xf32, #tpu.memory_space<vmem>>, %arg4: memref<1x1x1x64xf32, #tpu.memory_space<vmem>>, %arg5: memref<1x1x1x64xf32, #tpu.memory_space<vmem>>) attributes {dimension_semantics = [#tpu.dimension_semantics<parallel>, #tpu.dimension_semantics<parallel>, #tpu.dimension_semantics<arbitrary>], iteration_bounds = array<i64: 2, 1, 1>, scalar_prefetch = 0 : i64, scratch_operands = 0 : i64, tpu.core_type = #tpu.core_type<tc>, window_params = [{transform_indices = @transform_0, window_bounds = array<i64: 1, 64, 64>}, {transform_indices = @transform_1, window_bounds = array<i64: 1, 1, 1, 64>}, {transform_indices = @transform_2, window_bounds = array<i64: 1, 1, 1, 64>}]} {
    %c0_i32 = arith.constant 0 : i32
    %0 = arith.cmpi eq, %arg2, %c0_i32 : i32
    %1 = arith.extui %0 : i1 to i32
    %c0_i32_0 = arith.constant 0 : i32
    %2 = arith.cmpi ne, %1, %c0_i32_0 : i32
    scf.if %2 {
      %cst_20 = arith.constant 0.000000e+00 : f32
      %22 = vector.broadcast %cst_20 : f32 to vector<1x1x1x64xf32>
      %c0_21 = arith.constant 0 : index
      %c0_22 = arith.constant 0 : index
      %c0_23 = arith.constant 0 : index
      %c0_24 = arith.constant 0 : index
      %23 = vector.load %arg4[%c0_21, %c0_22, %c0_23, %c0_24] : memref<1x1x1x64xf32, #tpu.memory_space<vmem>>, vector<1x1x1x64xf32>
      tpu.vector_store %arg4[%c0_21, %c0_22, %c0_23, %c0_24], %22 {strides = array<i32>} : memref<1x1x1x64xf32, #tpu.memory_space<vmem>>, vector<1x1x1x64xf32>,
      %cst_25 = arith.constant 0.000000e+00 : f32
      %24 = vector.broadcast %cst_25 : f32 to vector<1x1x1x64xf32>
      %c0_26 = arith.constant 0 : index
      %c0_27 = arith.constant 0 : index
      %c0_28 = arith.constant 0 : index
      %c0_29 = arith.constant 0 : index
      %25 = vector.load %arg5[%c0_26, %c0_27, %c0_28, %c0_29] : memref<1x1x1x64xf32, #tpu.memory_space<vmem>>, vector<1x1x1x64xf32>
      tpu.vector_store %arg5[%c0_26, %c0_27, %c0_28, %c0_29], %24 {strides = array<i32>} : memref<1x1x1x64xf32, #tpu.memory_space<vmem>>, vector<1x1x1x64xf32>,
    } else {
    }
    %c0 = arith.constant 0 : index
    %c0_1 = arith.constant 0 : index
    %c0_2 = arith.constant 0 : index
    %3 = vector.load %arg3[%c0, %c0_1, %c0_2] : memref<1x64x64xf32, #tpu.memory_space<vmem>>, vector<1x64x64xf32>
    %4 = vector.shape_cast %3 : vector<1x64x64xf32> to vector<64x64xf32>
    %c0_3 = arith.constant 0 : index
    %c0_4 = arith.constant 0 : index
    %c0_5 = arith.constant 0 : index
    %c0_6 = arith.constant 0 : index
    %5 = vector.load %arg4[%c0_3, %c0_4, %c0_5, %c0_6] : memref<1x1x1x64xf32, #tpu.memory_space<vmem>>, vector<1x1x1x64xf32>
    %6 = vector.shape_cast %5 : vector<1x1x1x64xf32> to vector<1x64xf32>
    %cst = arith.constant dense<0.000000e+00> : vector<64xf32>
    %7 = vector.multi_reduction <add>, %4, %cst [0] : vector<64x64xf32> to vector<64xf32>
    %8 = vector.shape_cast %7 : vector<64xf32> to vector<1x64xf32>
    %9 = arith.addf %6, %8 : vector<1x64xf32>
    %c0_7 = arith.constant 0 : index
    %c0_8 = arith.constant 0 : index
    %c0_9 = arith.constant 0 : index
    %c0_10 = arith.constant 0 : index
    %10 = vector.load %arg4[%c0_7, %c0_8, %c0_9, %c0_10] : memref<1x1x1x64xf32, #tpu.memory_space<vmem>>, vector<1x1x1x64xf32>
    %11 = vector.shape_cast %10 : vector<1x1x1x64xf32> to vector<1x64xf32>
    %12 = vector.shape_cast %9 : vector<1x64xf32> to vector<1x1x1x64xf32>
    tpu.vector_store %arg4[%c0_7, %c0_8, %c0_9, %c0_10], %12 {strides = array<i32>} : memref<1x1x1x64xf32, #tpu.memory_space<vmem>>, vector<1x1x1x64xf32>,
    %c0_11 = arith.constant 0 : index
    %c0_12 = arith.constant 0 : index
    %c0_13 = arith.constant 0 : index
    %c0_14 = arith.constant 0 : index
    %13 = vector.load %arg5[%c0_11, %c0_12, %c0_13, %c0_14] : memref<1x1x1x64xf32, #tpu.memory_space<vmem>>, vector<1x1x1x64xf32>
    %14 = vector.shape_cast %13 : vector<1x1x1x64xf32> to vector<1x64xf32>
    %15 = arith.mulf %4, %4 : vector<64x64xf32>
    %cst_15 = arith.constant dense<0.000000e+00> : vector<64xf32>
    %16 = vector.multi_reduction <add>, %15, %cst_15 [0] : vector<64x64xf32> to vector<64xf32>
    %17 = vector.shape_cast %16 : vector<64xf32> to vector<1x64xf32>
    %18 = arith.addf %14, %17 : vector<1x64xf32>
    %c0_16 = arith.constant 0 : index
    %c0_17 = arith.constant 0 : index
    %c0_18 = arith.constant 0 : index
    %c0_19 = arith.constant 0 : index
    %19 = vector.load %arg5[%c0_16, %c0_17, %c0_18, %c0_19] : memref<1x1x1x64xf32, #tpu.memory_space<vmem>>, vector<1x1x1x64xf32>
    %20 = vector.shape_cast %19 : vector<1x1x1x64xf32> to vector<1x64xf32>
    %21 = vector.shape_cast %18 : vector<1x64xf32> to vector<1x1x1x64xf32>
    tpu.vector_store %arg5[%c0_16, %c0_17, %c0_18, %c0_19], %21 {strides = array<i32>} : memref<1x1x1x64xf32, #tpu.memory_space<vmem>>, vector<1x1x1x64xf32>,
    return
  }
  func.func @transform_0(%arg0: i32, %arg1: i32, %arg2: i32) -> (i32, i32, i32) {
    %c1_i32 = arith.constant 1 : i32
    %0 = arith.muli %arg1, %c1_i32 : i32
    %1 = arith.addi %0, %arg2 : i32
    %c0_i32 = arith.constant 0 : i32
    %c0_i32_0 = arith.constant 0 : i32
    return %arg0, %1, %c0_i32 : i32, i32, i32
  }
  func.func @transform_1(%arg0: i32, %arg1: i32, %arg2: i32) -> (i32, i32, i32, i32) {
    %c0_i32 = arith.constant 0 : i32
    %c0_i32_0 = arith.constant 0 : i32
    %c0_i32_1 = arith.constant 0 : i32
    return %arg0, %arg1, %c0_i32, %c0_i32_0 : i32, i32, i32, i32
  }
  func.func @transform_2(%arg0: i32, %arg1: i32, %arg2: i32) -> (i32, i32, i32, i32) {
    %c0_i32 = arith.constant 0 : i32
    %c0_i32_0 = arith.constant 0 : i32
    %c0_i32_1 = arith.constant 0 : i32
    return %arg0, %arg1, %c0_i32, %c0_i32_0 : i32, i32, i32, i32
  }
}

</mosaic_0001>

<bundles_post_ra>
// kernel: tpu_custom_call.1
= control target key start
LH: loop header
LB: loop body
LE: loop exit
PB: predicated region body
PF: predicated region fallthrough
CT: control target
= control target key end

     0   :  { %8 = vsyncpa [#allocation3], 0  ;;  %s922_s0 = inlined_call_operand.hbm [shape: f32[2,64,64], index: 0, kind: input, shape index: {}]   ;;  %s923_s1 = inlined_call_operand.hbm [shape: f32[2,1,1,64], index: 1, kind: output, shape index: {0}]   ;;  %s924_s2 = inlined_call_operand.hbm [shape: f32[2,1,1,64], index: 2, kind: output, shape index: {1}]  }
   0x1   :  { %10 = vsyncpa [#allocation3 + $0x1], 0 }
   0x2   :  { %11 = vsyncpa [#allocation4], 0 }
   0x3   :  { %13 = vsyncpa [#allocation4 + $0x1], 0 }
   0x4   :  { %14 = vsyncpa [#allocation7], 0 }
   0x5   :  { %16 = vsyncpa [#allocation7 + $0x1], 0  ;;  %s670_s9 = smov 0   ;;  %s672_s10 = smov 0  }
   0x6   :  { %s674_s11 = smov 0   ;;  %s676_s12 = smov 0  }
   0x7   :  { %s678_s13 = smov 0   ;;  %s680_s14 = smov 0  }
   0x8 LB: > { %s419_s15 = sadd.s32 4294967295, %s647_s14   ;;  %s420_s16 = sadd.s32 4294967294, %s647_s14   ;;  %s647_s14 = sphi %s680_s14, %s22_s14   ;;  %s643_s13 = sphi %s678_s13, %s939_s13   ;;  %s639_s12 = sphi %s676_s12, %s938_s12   ;;  %s635_s11 = sphi %s674_s11, %s937_s11   ;;  %s631_s10 = sphi %s672_s10, %s936_s10   ;;  %s627_s9 = sphi %s670_s9, %s935_s9  }
   0x9   : > { %s41_s17 = sadd.s32 1, %s643_s13  ;;  %s52_s18 = sadd.s32 1, %s635_s11 }
   0xa   : > { %p43_p0 = scmp.ge.s32.totalorder %s41_s17, 2  ;;  %p59_p1 = scmp.ne.s32.totalorder %s635_s11, %s631_s10 }
   0xb   : > { %p60_p2 = scmp.eq.s32.totalorder %s647_s14, 0  ;;  %p65_p3 = scmp.ne.s32.totalorder %s631_s10, %s627_s9 }
   0xc   : > { %s941_s17 = smov (%p43_p0, %s41_s17), 0  ;;  %p66_p5 = scmp.eq.s32.totalorder %s419_s15, 0 }
   0xd   : > { %p711_p4 = por %p60_p2, %p59_p1  ;;  %s47_s20 = ssub.s32 %s643_s13, %s941_s17 }
   0xe   : > { %p91_p6 = scmp.eq.s32.totalorder %s419_s15, 1  ;;  %p50_p7 = scmp.eq.s32.totalorder %s47_s20, 0 }
   0xf   : > { %p717_p8 = por %p66_p5, %p65_p3  ;;  %p97_p10 = scmp.eq.s32.totalorder %s420_s16, 1 }
  0x10   : > { %p721_p9 = por %p91_p6, %p59_p1  ;;  %p450_p13 = scmp.lt.s32.totalorder %s647_s14, 2 }
  0x11   : > { %s726_s23 = scalar_select %p50_p7, %s635_s11, %s52_s18  }
  0x12   : > { %s928_s22 = scalar_select %p721_p9, 1, 0 }
  0x13   : > { %p728_p11 = por %p97_p10, %p65_p3  ;;  %s145_s25 = sand.u32 1, %s635_s11  }
  0x14   : > { %s423_s26 = sshll.u32 %s145_s25, 6  ;;  %s432_s27 = sshll.u32 %s643_s13, 10 }
  0x15   : > { %s929_s24 = scalar_select %p728_p11, 1, 0 }
  0x16   : > { %s739_s30 = scalar_lea.hbm %s922_s0, %s432_s27  ;;  %s149_s3 = scalar_lea.vmem [#allocation2], %s423_s26 }
  0x17   : > { %s159_s4 = sshll.u32 %s149_s3, 4  ;;  %p745_p0 = pnand %p450_p13, %p711_p4  ;;  %s741_s4 = int_to_ptr.vmem [resolvable:$true] %s159_s4 }
  0x18   : > { %s750_s6 = scalar_lea.sflag [#allocation3], %s145_s25  ;;  %s503_s7 = scalar_lea.hbm %s739_s30, 1024 }
  0x19   : > { %p504_p2 = scmp.ne.s32.totalorder %s739_s30, %s503_s7  ;;  %p505_p3 = pneg %p745_p0 }
  0x1a   : > { %s508_s16 = scalar_lea.hbm %s922_s0, 2048  ;;  %p509_p4 = scmp.lt.u32.totalorder %s739_s30, %s922_s0 }
  0x1b   : > { %p506_p5 = pnand %p505_p3, %p504_p2  ;;  %p510_p7 = scmp.lt.u32.totalorder %s508_s16, %s503_s7 }
  0x1c   : > { %p512_p13 = scmp.lt.u32.totalorder %s503_s7, %s739_s30 }
  0x1d   : > { %p507_p6 = pneg %p506_p5  ;;  %p511_p10 = por %p510_p7, %p509_p4 }
  0x1f   : > { %p513_p12 = por %p512_p13, %p511_p10 }
  0x21   : > { %p514_p1 = pnand %p513_p12, %p507_p6 }
  0x23   : > { %517 = shalt.err (!%p514_p1)
}
  0x24   : > { %s518_s20 = scalar_lea.vmem %s741_s4, 1024  ;;  %s649_s25 = smov [#allocation2]  }
  0x25   : > { %p519_p2 = scmp.ne.s32.totalorder %s741_s4, %s518_s20  ;;  %s523_s26 = sshll.u32 %s649_s25, 4  ;;  %s524_s26 = int_to_ptr.vmem [resolvable:$false] %s523_s26 }
  0x26   : > { %s525_s27 = scalar_lea.vmem %s524_s26, 2048  ;;  %p526_p9 = scmp.lt.s32.totalorder %s741_s4, %s524_s26 }
  0x27   : > { %p521_p5 = pnand %p519_p2, %p505_p3  ;;  %p527_p4 = scmp.lt.s32.totalorder %s525_s27, %s518_s20 }
  0x29   : > { %p522_p11 = pneg %p521_p5  ;;  %p528_p7 = por %p527_p4, %p526_p9 }
  0x2b   : > { %p529_p10 = pnand %p528_p7, %p522_p11 }
  0x2d   : > { %532 = shalt.err (!%p529_p10)
}
  0x2e   : > { %s650_s28 = smov 128   ;;  %s651_s29 = smov 8  }
  0x2f   : > { %442 = dma.hbm_to_vmem [thread:$0]  (!%p745_p0), %s739_s30, 1024, %s741_s4, %s750_s6, %s650_s28, %s650_s28, %s651_s29  }
  0x30   : > { %p167_p12 = scmp.lt.s32.totalorder %s647_s14, 3  ;;  %p931_p1 = scmp.ge.s32.totalorder %s647_s14, 1 }
  0x32   : > { %p168_p3 = pnand %p931_p1, %p167_p12 }
  0x33   : > { %s782_s3 = sand.u32 (!%p168_p3), 1, %s631_s10  }
  0x34   : > { %171 = sbr.rel (%p168_p3) target bundleno = 128 (0x80), region = 24  ;;  %s427_s7 = sshll.u32 (!%p168_p3), %s782_s3, 6 }
  0x35   : > { %s174_s8 = scalar_lea.sflag (!%p168_p3), [#allocation3], %s782_s3  ;;  %s786_s15 = scalar_lea.vmem (!%p168_p3), [#allocation2], %s427_s7 }
  0x3b   : > { %614 = dma.done.wait (%p717_p8), %s174_s8, 1024  }
  0x3c   : > { %616 = vsyncadd (%p717_p8), %s174_s8, 4294966272  ;;  %vm207_vm0 = vcmask 516096   ;;  %s793_s30 = scalar_lea.vmem [#allocation5], %s782_s3  ;;  %v652_v0 = vmov 0.0   ;;  %s798_s4 = scalar_lea.vmem [#allocation6], %s782_s3  ;;  %vm219_vm1 = vcmask 523264  }
  0x3d   : > { %208 = vst.msk [vmem:[%s793_s30] sm:$0x1] %vm207_vm0, %v652_v0  ;;  %209 = vst.msk [vmem:[%s798_s4] sm:$0x1] %vm207_vm0, %v652_v0  ;;  %v210_v1 = vld [vmem:[%s786_s15] sm:$0xff]  ;;  %v211_v2 = vld [vmem:[%s786_s15 + $0x8] sm:$0xff] }
  0x3e   : > { %v212_v3 = vld [vmem:[%s786_s15 + $0x10] sm:$0xff]  ;;  %v213_v4 = vld [vmem:[%s786_s15 + $0x18] sm:$0xff]  ;;  %v220_v5 = vsel %vm219_vm1, %v210_v1, 0.0  ;;  %v221_v6 = vsel %vm219_vm1, %v211_v2, 0.0  ;;  %v245_v8 = vmul.f32 %v210_v1, %v210_v1  ;;  %v214_v9 = vld [vmem:[%s786_s15 + $0x20] sm:$0xff]  ;;  %v246_v11 = vmul.f32 %v211_v2, %v211_v2  ;;  %s428_s21 = sshll.u32 %s639_s12, 4 }
  0x3f   : > { %v223_v7 = vsel %vm219_vm1, %v212_v3, 0.0  ;;  %v222_v10 = vadd.f32 %v221_v6, %v220_v5  ;;  %v225_v12 = vsel %vm219_vm1, %v213_v4, 0.0  ;;  %v247_v13 = vmul.f32 %v212_v3, %v212_v3  ;;  %v215_v14 = vld [vmem:[%s786_s15 + $0x28] sm:$0xff]  ;;  %v216_v21 = vld [vmem:[%s786_s15 + $0x30] sm:$0xff]  ;;  %v217_v28 = vld [vmem:[%s786_s15 + $0x38] sm:$0xff]  ;;  %s294_s5 = sshll.u32 %s793_s30, 4  ;;  %s834_s18 = scalar_lea.hbm %s923_s1, %s428_s21  ;;  %s836_s5 = int_to_ptr.vmem [resolvable:$true] %s294_s5 }
  0x40   : > { %v248_v16 = vmul.f32 %v213_v4, %v213_v4  ;;  %v227_v17 = vsel %vm219_vm1, %v214_v9, 0.0  ;;  %v249_v18 = vmul.f32 %v214_v9, %v214_v9  ;;  %v253_v19 = vsel %vm219_vm1, %v245_v8, 0.0  ;;  %s308_s19 = sshll.u32 %s798_s4, 4  ;;  %s277_s20 = scalar_lea.sflag [#allocation4], %s782_s3  ;;  %s873_s19 = int_to_ptr.vmem [resolvable:$true] %s308_s19 }
  0x41   : > { %v224_v15 = vadd.f32 %v223_v7, %v222_v10  ;;  %v254_v20 = vsel %vm219_vm1, %v246_v11, 0.0  ;;  %v256_v24 = vsel %vm219_vm1, %v247_v13, 0.0  ;;  %v229_v25 = vsel %vm219_vm1, %v215_v14, 0.0  ;;  %s533_s25 = scalar_lea.vmem %s836_s5, 16  ;;  %p932_p9 = scmp.ne.s32.totalorder %s928_s22, 0 }
  0x42   : > { %v255_v23 = vadd.f32 %v254_v20, %v253_v19  ;;  %v250_v26 = vmul.f32 %v215_v14, %v215_v14  ;;  %v258_v27 = vsel %vm219_vm1, %v248_v16, 0.0  ;;  %v231_v31 = vsel %vm219_vm1, %v216_v21, 0.0  ;;  %p534_p8 = scmp.ne.s32.totalorder %s836_s5, %s533_s25  ;;  %s653_s26 = smov [#allocation5]  }
  0x43   : > { %v226_v22 = vadd.f32 %v225_v12, %v224_v15  ;;  %v251_v32 = vmul.f32 %v216_v21, %v216_v21  ;;  %v260_v33 = vsel %vm219_vm1, %v249_v18, 0.0  ;;  %v233_v36 = vsel %vm219_vm1, %v217_v28, 0.0  ;;  %s537_s27 = sshll.u32 %s653_s26, 4  ;;  %s538_s27 = int_to_ptr.vmem [resolvable:$false] %s537_s27 }
  0x44   : > { %v257_v30 = vadd.f32 %v256_v24, %v255_v23  ;;  %v252_v37 = vmul.f32 %v217_v28, %v217_v28  ;;  %v262_v38 = vsel %vm219_vm1, %v250_v26, 0.0  ;;  %v218_v55 = vld [vmem:[%s793_s30] sm:$0x1]  ;;  %p535_p11 = pnand %p534_p8, %p932_p9  ;;  %s539_s28 = scalar_lea.vmem %s538_s27, 32 }
  0x45   : > { %v228_v29 = vadd.f32 %v227_v17, %v226_v22  ;;  %v264_v41 = vsel %vm219_vm1, %v251_v32, 0.0  ;;  %v244_v60 = vld [vmem:[%s798_s4] sm:$0x1]  ;;  %p540_p6 = scmp.lt.s32.totalorder %s836_s5, %s538_s27  ;;  %p541_p13 = scmp.lt.s32.totalorder %s539_s28, %s533_s25 }
  0x46   : > { %v259_v35 = vadd.f32 %v258_v27, %v257_v30  ;;  %v266_v44 = vsel %vm219_vm1, %v252_v37, 0.0  ;;  %p536_p0 = pneg %p535_p11 }
  0x47   : > { %v230_v34 = vadd.f32 %v229_v25, %v228_v29  ;;  %p542_p2 = por %p541_p13, %p540_p6 }
  0x48   : > { %v261_v40 = vadd.f32 %v260_v33, %v259_v35 }
  0x49   : > { %v232_v39 = vadd.f32 %v231_v31, %v230_v34  ;;  %p543_p5 = pnand %p542_p2, %p536_p0 }
  0x4a   : > { %v263_v43 = vadd.f32 %v262_v38, %v261_v40 }
  0x4b   : > { %v234_v42 = vadd.f32 %v233_v36, %v232_v39 }
  0x4c   : > { %v265_v46 = vadd.f32 %v264_v41, %v263_v43 }
  0x4d   : > { %v235_v45 = vrot.slane %v234_v42, 4 }
  0x4e   : > { %v267_v48 = vadd.f32 %v266_v44, %v265_v46 }
  0x4f   : > { %v236_v47 = vadd.f32 %v235_v45, %v234_v42 }
  0x50   : > { %v268_v50 = vrot.slane %v267_v48, 4 }
  0x51   : > { %v237_v49 = vrot.slane %v236_v47, 2 }
  0x52   : > { %v269_v52 = vadd.f32 %v268_v50, %v267_v48 }
  0x53   : > { %v238_v51 = vadd.f32 %v237_v49, %v236_v47 }
  0x54   : > { %v270_v54 = vrot.slane %v269_v52, 2 }
  0x55   : > { %v239_v53 = vrot.slane %v238_v51, 1 }
  0x56   : > { %v271_v57 = vadd.f32 %v270_v54, %v269_v52 }
  0x57   : > { %v240_v56 = vadd.f32 %v239_v53, %v238_v51 }
  0x58   : > { %v272_v59 = vrot.slane %v271_v57, 1 }
  0x59   : > { %v241_v58 = vadd.f32 %v240_v56, %v218_v55 }
  0x5a   : > { %v273_v61 = vadd.f32 %v272_v59, %v271_v57 }
  0x5b   : > { %243 = vst.msk [vmem:[%s793_s30] sm:$0x1] %vm207_vm0, %v241_v58 }
  0x5c   : > { %546 = shalt.err (!%p543_p5)
}
  0x5d   : > { %s547_s29 = scalar_lea.hbm %s834_s18, 16  ;;  %s551_s15 = scalar_lea.hbm %s923_s1, 32 }
  0x5e   : > { %p548_p4 = scmp.ne.s32.totalorder %s834_s18, %s547_s29  ;;  %p552_p12 = scmp.lt.u32.totalorder %s834_s18, %s923_s1 }
  0x5f   : > { %p553_p1 = scmp.lt.u32.totalorder %s551_s15, %s547_s29  ;;  %p555_p8 = scmp.lt.u32.totalorder %s547_s29, %s834_s18 }
  0x60   : > { %p549_p7 = pnand %p548_p4, %p932_p9 }
  0x61   : > { %p554_p3 = por %p553_p1, %p552_p12 }
  0x62   : > { %p550_p10 = pneg %p549_p7 }
  0x63   : > { %p556_p11 = por %p555_p8, %p554_p3 }
  0x65   : > { %p557_p0 = pnand %p556_p11, %p550_p10 }
  0x67   : > { %560 = shalt.err (!%p557_p0)
}
  0x68   : > { %435 = dma.vmem_to_hbm [thread:$0]  (%p932_p9), %s836_s5, 16, %s834_s18, %s277_s20   ;;  %v274_v62 = vadd.f32 %v273_v61, %v244_v60 }
  0x69   : > { %s869_s26 = scalar_lea.hbm %s924_s2, %s428_s21  ;;  %s281_s27 = scalar_lea.sflag [#allocation7], %s782_s3 }
  0x6a   : > { %275 = vst.msk [vmem:[%s798_s4] sm:$0x1] %vm207_vm0, %v274_v62  ;;  %s561_s28 = scalar_lea.vmem %s873_s19, 16  ;;  %s654_s12 = smov [#allocation6]  }
  0x6b   : > { %p562_p6 = scmp.ne.s32.totalorder %s873_s19, %s561_s28  ;;  %s565_s5 = sshll.u32 %s654_s12, 4  ;;  %s566_s5 = int_to_ptr.vmem [resolvable:$false] %s565_s5 }
  0x6c   : > { %s567_s18 = scalar_lea.vmem %s566_s5, 32  ;;  %p568_p5 = scmp.lt.s32.totalorder %s873_s19, %s566_s5 }
  0x6d   : > { %p563_p13 = pnand %p562_p6, %p932_p9  ;;  %p569_p4 = scmp.lt.s32.totalorder %s567_s18, %s561_s28 }
  0x6f   : > { %p564_p2 = pneg %p563_p13  ;;  %p570_p7 = por %p569_p4, %p568_p5 }
  0x71   : > { %p571_p10 = pnand %p570_p7, %p564_p2 }
  0x73   : > { %574 = shalt.err (!%p571_p10)
}
  0x74   : > { %s575_s3 = scalar_lea.hbm %s869_s26, 16  ;;  %s579_s20 = scalar_lea.hbm %s924_s2, 32 }
  0x75   : > { %p576_p12 = scmp.ne.s32.totalorder %s869_s26, %s575_s3  ;;  %p580_p8 = scmp.lt.u32.totalorder %s869_s26, %s924_s2 }
  0x76   : > { %p581_p11 = scmp.lt.u32.totalorder %s579_s20, %s575_s3  ;;  %p583_p6 = scmp.lt.u32.totalorder %s575_s3, %s869_s26 }
  0x77   : > { %p577_p1 = pnand %p576_p12, %p932_p9 }
  0x78   : > { %p582_p0 = por %p581_p11, %p580_p8 }
  0x79   : > { %p578_p3 = pneg %p577_p1 }
  0x7a   : > { %p584_p13 = por %p583_p6, %p582_p0 }
  0x7c   : > { %p585_p2 = pnand %p584_p13, %p578_p3 }
  0x7e   : > { %588 = shalt.err (!%p585_p2)
}
  0x7f   : > { %436 = dma.vmem_to_hbm [thread:$0]  (%p932_p9), %s873_s19, 16, %s869_s26, %s281_s27  }
  0x80 PF: > { %s320_s8 = sand.u32 1, %s627_s9   ;;  %p933_p5 = scmp.ne.s32.totalorder %s929_s24, 0 }
  0x81   : > { %p934_p4 = scmp.ge.s32.totalorder %s647_s14, 2  ;;  %s321_s15 = scalar_lea.sflag [#allocation4], %s320_s8 }
  0x83   : > { %p444_p7 = pnand %p934_p4, %p933_p5 }
  0x85   : > { %618 = dma.done.wait (!%p444_p7), %s321_s15, 16  }
  0x86   : > { %620 = vsyncadd (!%p444_p7), %s321_s15, 4294967280  ;;  %s329_s30 = scalar_lea.sflag [#allocation7], %s320_s8 }
  0x87   : > { %622 = dma.done.wait (!%p444_p7), %s329_s30, 16  }
  0x88   : > { %624 = vsyncadd (!%p444_p7), %s329_s30, 4294967280  ;;  %s22_s14 = sadd.s32 1, %s647_s14   ;;  %s935_s9 = smov %s631_s10 }
  0x89   : > { %p19_p10 = scmp.ge.s32.totalorder %s22_s14, 4   ;;  %s936_s10 = smov %s635_s11 }
  0x8a   : > { %s937_s11 = smov %s726_s23  ;;  %s938_s12 = smov %s643_s13 }
  0x8b   : > { %s939_s13 = smov %s941_s17  ;;  %21 = sbr.rel (!%p19_p10) target bundleno = 8 (0x8), region = 90 }
  0x92   :  { %333 = vsyncpa [#allocation3], 1 }
  0x93   :  { %335 = vsyncpa [#allocation3 + $0x1], 1 }
  0x94   :  { %336 = vsyncpa [#allocation4], 1 }
  0x95   :  { %338 = vsyncpa [#allocation4 + $0x1], 1 }
  0x96   :  { %339 = vsyncpa [#allocation7], 1 }
  0x97   :  { %341 = vsyncpa [#allocation7 + $0x1], 1 }

</bundles_post_ra>
